<compile_context>
chip_gen: v6e
topology: v6e:2x2x1
jax: 0.10.0
libtpu: 0.0.40
codegen_flags: <defaults>
</compile_context>

<pallas_src>
import jax
import jax.numpy as jnp
from jax.experimental import pallas as pl
from jax.experimental.pallas import tpu as pltpu  # noqa: F401  (TPU backend)

HIDDEN = 32          # hidden_channels
NUM_LAYERS = 3       # num_layers
NUM_TASKS = 1        # num_tasks (ogbg-molhiv)
BN_EPS = 1e-5        # torch.nn.BatchNorm1d eps
GEN_EPS = 1e-7       # GENConv message eps

ATOM_FEATURE_DIMS = [119, 4, 12, 12, 10, 6, 6, 2, 2]   # OGB full_atom_feature_dims
BOND_FEATURE_DIMS = [5, 6, 2]                           # OGB full_bond_feature_dims


# ------------------------------ fused Pallas kernel ------------------------------

def _fused_deepergcn_kernel(h0_ref, e_ref, ssrc_ref, adst_ref, vecs_ref,
                            wmlp_ref, pool_ref, wlin_ref, blin_ref, out_ref):
    """Entire DeeperGCN forward (3 GENConv layers + readout) in one kernel.

    layer 0 :  h = GENConv_0(h)
    layer i>0: h = h + GENConv_i(relu(BN_i(h)))        (DeepGCNLayer 'res+')
    readout :  out = Linear(mean_pool(relu(BN_0(h))))
    Dropout (p=0.2) is the identity in eval mode; BN is folded to scale/shift.
    """
    h = h0_ref[...]                       # [N, C] f32, stays resident all layers
    s_src = ssrc_ref[...]                 # [E, N] bf16  (gather source nodes)
    a_dst = adst_ref[...]                 # [N, E] bf16  (scatter-sum to dest)

    for li in range(NUM_LAYERS):          # static unroll, L = 3
        v = vecs_ref[li]                  # [8, C] packed per-layer vectors
        t, scale, shift, b_mlp = v[0:1, :], v[1:2, :], v[2:3, :], v[3:4, :]
        w_mlp = wmlp_ref[li]              # [C, C]  (stored as W.T: [in, out])
        e_emb = e_ref[li]                 # [E, C]  bond embeddings for layer li

        if li == 0:
            hin = h                       # layer 0: conv only (no pre-norm / residual)
        else:
            # pre-norm + ReLU; BN folded to a single fused multiply-add
            hin = jnp.maximum(h * scale + shift, 0.0)

        # message: msg_e = relu(h[src[e]] + edge_embed_e) + eps   (gather via bf16 one-hot matmul)
        h_src = jnp.dot(s_src, hin.astype(jnp.bfloat16),
                        preferred_element_type=jnp.float32)               # [E, C]
        msg = jnp.maximum(h_src + e_emb, 0.0) + GEN_EPS

        # per-destination softmax aggregation (temperature t), node-level ratio form:
        #   agg_n = sum_{e->n} exp(t*msg_e) * msg_e  /  sum_{e->n} exp(t*msg_e)
        # numerator & denominator scatters fused into ONE matmul via lane-concat.
        ex = jnp.exp(msg * t)                                              # [E, C]
        rhs = jnp.concatenate([ex * msg, ex], axis=-1).astype(jnp.bfloat16)  # [E, 2C]
        nd = jnp.dot(a_dst, rhs, preferred_element_type=jnp.float32)        # [N, 2C]
        numer, denom = nd[:, :HIDDEN], nd[:, HIDDEN:]
        # zero in-degree nodes: numer == denom == 0  ->  agg == 0 (no NaN)
        agg = numer * pl.reciprocal(jnp.maximum(denom, 1e-16), approx=True)

        # GENConv MLP (single Linear(C, C) + bias); 'res+' residual for li > 0
        conv = jnp.dot(agg + hin, w_mlp,
                       preferred_element_type=jnp.float32) + b_mlp         # [N, C]
        h = conv if li == 0 else h + conv

    # readout: relu(BN_0(h)) -> global mean pool (dense matmul) -> Linear
    v0 = vecs_ref[0]
    scale0, shift0 = v0[1:2, :], v0[2:3, :]
    hb = jnp.maximum(h * scale0 + shift0, 0.0)
    hg = jnp.dot(pool_ref[...], hb, preferred_element_type=jnp.float32)    # [G, C]
    out_ref[...] = jnp.dot(hg, wlin_ref[...],
                           preferred_element_type=jnp.float32) + blin_ref[...]


# ------------------------------ kernel wrapper ------------------------------

def fused_forward(h0, edge_embed, s_src, a_dst, layer_vecs, w_mlp, pool, w_lin, b_lin):
    num_graphs = pool.shape[0]
    return pl.pallas_call(
        _fused_deepergcn_kernel,
        out_shape=jax.ShapeDtypeStruct((num_graphs, NUM_TASKS), jnp.float32),
    )(h0, edge_embed, s_src, a_dst, layer_vecs, w_mlp, pool, w_lin, b_lin)


# ------------------------------ parameters -----------------------------------

def init_params(key):
    def nrm(k, shape, scale=0.1):
        return scale * jax.random.normal(k, shape, dtype=jnp.float32)

    keys = iter(jax.random.split(key, 128))
    atom_emb = [nrm(next(keys), (d, HIDDEN)) for d in ATOM_FEATURE_DIMS]
    bond_emb = [[nrm(next(keys), (d, HIDDEN)) for d in BOND_FEATURE_DIMS]
                for _ in range(NUM_LAYERS)]
    w_mlp = jnp.stack([nrm(next(keys), (HIDDEN, HIDDEN))
                       for _ in range(NUM_LAYERS)])                  # [L, C, C] (W.T)

    return {
        "atom_emb": atom_emb,
        "bond_emb": bond_emb,
        "w_mlp": w_mlp,
        "t": jnp.ones((NUM_LAYERS, HIDDEN), jnp.float32),            # GENConv t (init 1.0)
        "bn_gamma": 1.0 + nrm(next(keys), (NUM_LAYERS, HIDDEN)),
        "bn_beta": nrm(next(keys), (NUM_LAYERS, HIDDEN)),
        "bn_mean": nrm(next(keys), (NUM_LAYERS, HIDDEN)),
        "bn_var": 1.0 + 0.1 * jnp.abs(
            jax.random.normal(next(keys), (NUM_LAYERS, HIDDEN), jnp.float32)),
        "mlp_bias": nrm(next(keys), (NUM_LAYERS, HIDDEN)),
        "lin_w": nrm(next(keys), (HIDDEN, NUM_TASKS)),               # W.T ([in, out])
        "lin_b": nrm(next(keys), (1, NUM_TASKS)),
    }


# ------------------------------ forward ---------------------------------------

def mol_deeper_gcn(params, x_atoms, edge_index, edge_attr, batch, num_graphs):
    n_nodes = x_atoms.shape[0]

    # AtomEncoder: sum of per-feature embedding lookups (glue: gather outside kernel)
    h0 = jnp.zeros((n_nodes, HIDDEN), jnp.float32)
    for i, emb in enumerate(params["atom_emb"]):
        h0 = h0 + jnp.take(emb, x_atoms[:, i], axis=0)

    # BondEncoders for all layers, pre-stacked to one [L, E, C] tensor
    edge_embeds = []
    for tables in params["bond_emb"]:
        e = jnp.zeros((edge_attr.shape[0], HIDDEN), jnp.float32)
        for i, emb in enumerate(tables):
            e = e + jnp.take(emb, edge_attr[:, i], axis=0)
        edge_embeds.append(e)
    edge_embed = jnp.stack(edge_embeds, axis=0)                      # [L, E, C]

    # connectivity as bf16 one-hots (0/1 exact in bf16); exactly one matrix per role
    src, dst = edge_index[0], edge_index[1]
    s_src = jax.nn.one_hot(src, n_nodes, dtype=jnp.bfloat16)         # [E, N] gather src
    a_dst = jax.nn.one_hot(dst, n_nodes, dtype=jnp.bfloat16).T       # [N, E] scatter to dst

    # global_mean_pool as a dense [G, N] matrix (applied inside the kernel)
    one_hot_b = jax.nn.one_hot(batch, num_graphs, dtype=jnp.float32)   # [N, G]
    counts = jnp.maximum(one_hot_b.sum(axis=0), 1.0)                    # [G]
    pool = (one_hot_b / counts[None, :]).T                              # [G, N]

    # fold BatchNorm (eval mode) into per-layer (scale, shift); pack per-layer vectors:
    # rows = [t, bn_scale, bn_shift, mlp_bias, 0, 0, 0, 0]   -> [L, 8, C]
    bn_scale = params["bn_gamma"] * jax.lax.rsqrt(params["bn_var"] + BN_EPS)
    bn_shift = params["bn_beta"] - params["bn_mean"] * bn_scale
    layer_vecs = jnp.stack([params["t"], bn_scale, bn_shift, params["mlp_bias"]],
                           axis=1)                                   # [L, 4, C]
    layer_vecs = jnp.concatenate(
        [layer_vecs, jnp.zeros((NUM_LAYERS, 4, HIDDEN), jnp.float32)], axis=1)  # [L, 8, C]

    return fused_forward(h0, edge_embed, s_src, a_dst,
                         layer_vecs, params["w_mlp"],
                         pool, params["lin_w"], params["lin_b"])


# ------------------------------ main -------------------------------------------

if __name__ == "__main__":
    key = jax.random.PRNGKey(0)
    kp, kx, ke, ks, kd = jax.random.split(key, 5)
    params = init_params(kp)

    n_nodes, n_edges, num_graphs = 16, 24, 2

    # categorical atom / bond features within OGB feature cardinalities
    x_atoms = jnp.stack(
        [jax.random.randint(jax.random.fold_in(kx, i), (n_nodes,), 0, d)
         for i, d in enumerate(ATOM_FEATURE_DIMS)], axis=1)              # [N, 9] int32
    edge_attr = jnp.stack(
        [jax.random.randint(jax.random.fold_in(ke, i), (n_edges,), 0, d)
         for i, d in enumerate(BOND_FEATURE_DIMS)], axis=1)              # [E, 3] int32

    # two graphs of 8 nodes each; edges stay within their own graph
    half = n_edges // 2
    src0 = jax.random.randint(ks, (half,), 0, 8)
    dst0 = jax.random.randint(kd, (half,), 0, 8)
    src1 = jax.random.randint(jax.random.fold_in(ks, 1), (half,), 8, 16)
    dst1 = jax.random.randint(jax.random.fold_in(kd, 1), (half,), 8, 16)
    edge_index = jnp.stack([jnp.concatenate([src0, src1]),
                            jnp.concatenate([dst0, dst1])], axis=0)      # [2, E]
    batch = jnp.concatenate([jnp.zeros(8, jnp.int32), jnp.ones(8, jnp.int32)])

    out = mol_deeper_gcn(params, x_atoms, edge_index, edge_attr, batch, num_graphs)
    jax.block_until_ready(out)
    assert out.shape == (num_graphs, NUM_TASKS) and out.dtype == jnp.float32
    assert bool(jnp.all(jnp.isfinite(out)))
    print("KERNEL_OK")
</pallas_src>

<mosaic_0001>
module attributes {stable_mosaic.version = 11 : i64} {
  func.func @_fused_deepergcn_kernel(%arg0: memref<16x32xf32, #tpu.memory_space<vmem>>, %arg1: memref<3x24x32xf32, #tpu.memory_space<vmem>>, %arg2: memref<24x16xbf16, #tpu.memory_space<vmem>>, %arg3: memref<16x24xbf16, #tpu.memory_space<vmem>>, %arg4: memref<3x8x32xf32, #tpu.memory_space<vmem>>, %arg5: memref<3x32x32xf32, #tpu.memory_space<vmem>>, %arg6: memref<2x16xf32, #tpu.memory_space<vmem>>, %arg7: memref<32x1xf32, #tpu.memory_space<vmem>>, %arg8: memref<1x1xf32, #tpu.memory_space<vmem>>, %arg9: memref<2x1xf32, #tpu.memory_space<vmem>>) attributes {dimension_semantics = [], scalar_prefetch = 0 : i64, scratch_operands = 0 : i64, tpu.core_type = #tpu.core_type<tc>} {
    %c0 = arith.constant 0 : index
    %c0_0 = arith.constant 0 : index
    %0 = vector.load %arg0[%c0, %c0_0] : memref<16x32xf32, #tpu.memory_space<vmem>>, vector<16x32xf32>
    %c0_1 = arith.constant 0 : index
    %c0_2 = arith.constant 0 : index
    %1 = vector.load %arg2[%c0_1, %c0_2] : memref<24x16xbf16, #tpu.memory_space<vmem>>, vector<24x16xbf16>
    %c0_3 = arith.constant 0 : index
    %c0_4 = arith.constant 0 : index
    %2 = vector.load %arg3[%c0_3, %c0_4] : memref<16x24xbf16, #tpu.memory_space<vmem>>, vector<16x24xbf16>
    %c0_5 = arith.constant 0 : index
    %c0_6 = arith.constant 0 : index
    %c0_7 = arith.constant 0 : index
    %3 = vector.load %arg4[%c0_5, %c0_6, %c0_7] : memref<3x8x32xf32, #tpu.memory_space<vmem>>, vector<1x8x32xf32>
    %4 = vector.shape_cast %3 : vector<1x8x32xf32> to vector<8x32xf32>
    %5 = vector.extract_strided_slice %4 {offsets = [0, 0], sizes = [1, 32], strides = [1, 1]} : vector<8x32xf32> to vector<1x32xf32>
    %6 = vector.extract_strided_slice %4 {offsets = [3, 0], sizes = [1, 32], strides = [1, 1]} : vector<8x32xf32> to vector<1x32xf32>
    %c0_8 = arith.constant 0 : index
    %c0_9 = arith.constant 0 : index
    %c0_10 = arith.constant 0 : index
    %7 = vector.load %arg5[%c0_8, %c0_9, %c0_10] : memref<3x32x32xf32, #tpu.memory_space<vmem>>, vector<1x32x32xf32>
    %8 = vector.shape_cast %7 : vector<1x32x32xf32> to vector<32x32xf32>
    %c0_11 = arith.constant 0 : index
    %c0_12 = arith.constant 0 : index
    %c0_13 = arith.constant 0 : index
    %9 = vector.load %arg1[%c0_11, %c0_12, %c0_13] : memref<3x24x32xf32, #tpu.memory_space<vmem>>, vector<1x24x32xf32>
    %10 = vector.shape_cast %9 : vector<1x24x32xf32> to vector<24x32xf32>
    %11 = arith.truncf %0 : vector<16x32xf32> to vector<16x32xbf16>
    %cst = arith.constant dense<0.000000e+00> : vector<24x32xf32>
    %12 = tpu.matmul %1, %11, %cst {dimension_numbers = #tpu.dot_dimension_numbers<[1], [0], [0], [1], [0, 0, 1, 1], [], []>} : vector<24x16xbf16>, vector<16x32xbf16>, vector<24x32xf32> -> vector<24x32xf32>
    %13 = arith.addf %12, %10 : vector<24x32xf32>
    %cst_14 = arith.constant 0.000000e+00 : f32
    %14 = vector.broadcast %cst_14 : f32 to vector<24x32xf32>
    %15 = arith.maximumf %13, %14 : vector<24x32xf32>
    %cst_15 = arith.constant 1.000000e-07 : f32
    %16 = vector.broadcast %cst_15 : f32 to vector<24x32xf32>
    %17 = arith.addf %15, %16 : vector<24x32xf32>
    %18 = vector.broadcast %5 : vector<1x32xf32> to vector<24x32xf32>
    %19 = arith.mulf %17, %18 : vector<24x32xf32>
    %20 = math.exp %19 : vector<24x32xf32>
    %21 = arith.mulf %20, %17 : vector<24x32xf32>
    %22 = tpu.concatenate %21, %20 in 1 : vector<24x32xf32>, vector<24x32xf32> -> vector<24x64xf32>
    %23 = arith.truncf %22 : vector<24x64xf32> to vector<24x64xbf16>
    %cst_16 = arith.constant dense<0.000000e+00> : vector<16x64xf32>
    %24 = tpu.matmul %2, %23, %cst_16 {dimension_numbers = #tpu.dot_dimension_numbers<[1], [0], [0], [1], [0, 0, 1, 1], [], []>} : vector<16x24xbf16>, vector<24x64xbf16>, vector<16x64xf32> -> vector<16x64xf32>
    %25 = vector.extract_strided_slice %24 {offsets = [0, 0], sizes = [16, 32], strides = [1, 1]} : vector<16x64xf32> to vector<16x32xf32>
    %26 = vector.extract_strided_slice %24 {offsets = [0, 32], sizes = [16, 32], strides = [1, 1]} : vector<16x64xf32> to vector<16x32xf32>
    %cst_17 = arith.constant 1.000000e-16 : f32
    %27 = vector.broadcast %cst_17 : f32 to vector<16x32xf32>
    %28 = arith.maximumf %26, %27 : vector<16x32xf32>
    %29 = tpu.reciprocal %28 {approx = true} : vector<16x32xf32> -> vector<16x32xf32>
    %30 = arith.mulf %25, %29 : vector<16x32xf32>
    %31 = arith.addf %30, %0 : vector<16x32xf32>
    %cst_18 = arith.constant dense<0.000000e+00> : vector<16x32xf32>
    %32 = tpu.matmul %31, %8, %cst_18 {dimension_numbers = #tpu.dot_dimension_numbers<[1], [0], [0], [1], [0, 0, 1, 1], [], []>} : vector<16x32xf32>, vector<32x32xf32>, vector<16x32xf32> -> vector<16x32xf32>
    %33 = vector.broadcast %6 : vector<1x32xf32> to vector<16x32xf32>
    %34 = arith.addf %32, %33 : vector<16x32xf32>
    %c1 = arith.constant 1 : index
    %c0_19 = arith.constant 0 : index
    %c0_20 = arith.constant 0 : index
    %35 = vector.load %arg4[%c1, %c0_19, %c0_20] : memref<3x8x32xf32, #tpu.memory_space<vmem>>, vector<1x8x32xf32>
    %36 = vector.shape_cast %35 : vector<1x8x32xf32> to vector<8x32xf32>
    %37 = vector.extract_strided_slice %36 {offsets = [0, 0], sizes = [1, 32], strides = [1, 1]} : vector<8x32xf32> to vector<1x32xf32>
    %38 = vector.extract_strided_slice %36 {offsets = [1, 0], sizes = [1, 32], strides = [1, 1]} : vector<8x32xf32> to vector<1x32xf32>
    %39 = vector.extract_strided_slice %36 {offsets = [2, 0], sizes = [1, 32], strides = [1, 1]} : vector<8x32xf32> to vector<1x32xf32>
    %40 = vector.extract_strided_slice %36 {offsets = [3, 0], sizes = [1, 32], strides = [1, 1]} : vector<8x32xf32> to vector<1x32xf32>
    %c1_21 = arith.constant 1 : index
    %c0_22 = arith.constant 0 : index
    %c0_23 = arith.constant 0 : index
    %41 = vector.load %arg5[%c1_21, %c0_22, %c0_23] : memref<3x32x32xf32, #tpu.memory_space<vmem>>, vector<1x32x32xf32>
    %42 = vector.shape_cast %41 : vector<1x32x32xf32> to vector<32x32xf32>
    %c1_24 = arith.constant 1 : index
    %c0_25 = arith.constant 0 : index
    %c0_26 = arith.constant 0 : index
    %43 = vector.load %arg1[%c1_24, %c0_25, %c0_26] : memref<3x24x32xf32, #tpu.memory_space<vmem>>, vector<1x24x32xf32>
    %44 = vector.shape_cast %43 : vector<1x24x32xf32> to vector<24x32xf32>
    %45 = vector.broadcast %38 : vector<1x32xf32> to vector<16x32xf32>
    %46 = arith.mulf %34, %45 : vector<16x32xf32>
    %47 = vector.broadcast %39 : vector<1x32xf32> to vector<16x32xf32>
    %48 = arith.addf %46, %47 : vector<16x32xf32>
    %cst_27 = arith.constant 0.000000e+00 : f32
    %49 = vector.broadcast %cst_27 : f32 to vector<16x32xf32>
    %50 = arith.maximumf %48, %49 : vector<16x32xf32>
    %51 = arith.truncf %50 : vector<16x32xf32> to vector<16x32xbf16>
    %cst_28 = arith.constant dense<0.000000e+00> : vector<24x32xf32>
    %52 = tpu.matmul %1, %51, %cst_28 {dimension_numbers = #tpu.dot_dimension_numbers<[1], [0], [0], [1], [0, 0, 1, 1], [], []>} : vector<24x16xbf16>, vector<16x32xbf16>, vector<24x32xf32> -> vector<24x32xf32>
    %53 = arith.addf %52, %44 : vector<24x32xf32>
    %cst_29 = arith.constant 0.000000e+00 : f32
    %54 = vector.broadcast %cst_29 : f32 to vector<24x32xf32>
    %55 = arith.maximumf %53, %54 : vector<24x32xf32>
    %cst_30 = arith.constant 1.000000e-07 : f32
    %56 = vector.broadcast %cst_30 : f32 to vector<24x32xf32>
    %57 = arith.addf %55, %56 : vector<24x32xf32>
    %58 = vector.broadcast %37 : vector<1x32xf32> to vector<24x32xf32>
    %59 = arith.mulf %57, %58 : vector<24x32xf32>
    %60 = math.exp %59 : vector<24x32xf32>
    %61 = arith.mulf %60, %57 : vector<24x32xf32>
    %62 = tpu.concatenate %61, %60 in 1 : vector<24x32xf32>, vector<24x32xf32> -> vector<24x64xf32>
    %63 = arith.truncf %62 : vector<24x64xf32> to vector<24x64xbf16>
    %cst_31 = arith.constant dense<0.000000e+00> : vector<16x64xf32>
    %64 = tpu.matmul %2, %63, %cst_31 {dimension_numbers = #tpu.dot_dimension_numbers<[1], [0], [0], [1], [0, 0, 1, 1], [], []>} : vector<16x24xbf16>, vector<24x64xbf16>, vector<16x64xf32> -> vector<16x64xf32>
    %65 = vector.extract_strided_slice %64 {offsets = [0, 0], sizes = [16, 32], strides = [1, 1]} : vector<16x64xf32> to vector<16x32xf32>
    %66 = vector.extract_strided_slice %64 {offsets = [0, 32], sizes = [16, 32], strides = [1, 1]} : vector<16x64xf32> to vector<16x32xf32>
    %cst_32 = arith.constant 1.000000e-16 : f32
    %67 = vector.broadcast %cst_32 : f32 to vector<16x32xf32>
    %68 = arith.maximumf %66, %67 : vector<16x32xf32>
    %69 = tpu.reciprocal %68 {approx = true} : vector<16x32xf32> -> vector<16x32xf32>
    %70 = arith.mulf %65, %69 : vector<16x32xf32>
    %71 = arith.addf %70, %50 : vector<16x32xf32>
    %cst_33 = arith.constant dense<0.000000e+00> : vector<16x32xf32>
    %72 = tpu.matmul %71, %42, %cst_33 {dimension_numbers = #tpu.dot_dimension_numbers<[1], [0], [0], [1], [0, 0, 1, 1], [], []>} : vector<16x32xf32>, vector<32x32xf32>, vector<16x32xf32> -> vector<16x32xf32>
    %73 = vector.broadcast %40 : vector<1x32xf32> to vector<16x32xf32>
    %74 = arith.addf %72, %73 : vector<16x32xf32>
    %75 = arith.addf %34, %74 : vector<16x32xf32>
    %c2 = arith.constant 2 : index
    %c0_34 = arith.constant 0 : index
    %c0_35 = arith.constant 0 : index
    %76 = vector.load %arg4[%c2, %c0_34, %c0_35] : memref<3x8x32xf32, #tpu.memory_space<vmem>>, vector<1x8x32xf32>
    %77 = vector.shape_cast %76 : vector<1x8x32xf32> to vector<8x32xf32>
    %78 = vector.extract_strided_slice %77 {offsets = [0, 0], sizes = [1, 32], strides = [1, 1]} : vector<8x32xf32> to vector<1x32xf32>
    %79 = vector.extract_strided_slice %77 {offsets = [1, 0], sizes = [1, 32], strides = [1, 1]} : vector<8x32xf32> to vector<1x32xf32>
    %80 = vector.extract_strided_slice %77 {offsets = [2, 0], sizes = [1, 32], strides = [1, 1]} : vector<8x32xf32> to vector<1x32xf32>
    %81 = vector.extract_strided_slice %77 {offsets = [3, 0], sizes = [1, 32], strides = [1, 1]} : vector<8x32xf32> to vector<1x32xf32>
    %c2_36 = arith.constant 2 : index
    %c0_37 = arith.constant 0 : index
    %c0_38 = arith.constant 0 : index
    %82 = vector.load %arg5[%c2_36, %c0_37, %c0_38] : memref<3x32x32xf32, #tpu.memory_space<vmem>>, vector<1x32x32xf32>
    %83 = vector.shape_cast %82 : vector<1x32x32xf32> to vector<32x32xf32>
    %c2_39 = arith.constant 2 : index
    %c0_40 = arith.constant 0 : index
    %c0_41 = arith.constant 0 : index
    %84 = vector.load %arg1[%c2_39, %c0_40, %c0_41] : memref<3x24x32xf32, #tpu.memory_space<vmem>>, vector<1x24x32xf32>
    %85 = vector.shape_cast %84 : vector<1x24x32xf32> to vector<24x32xf32>
    %86 = vector.broadcast %79 : vector<1x32xf32> to vector<16x32xf32>
    %87 = arith.mulf %75, %86 : vector<16x32xf32>
    %88 = vector.broadcast %80 : vector<1x32xf32> to vector<16x32xf32>
    %89 = arith.addf %87, %88 : vector<16x32xf32>
    %cst_42 = arith.constant 0.000000e+00 : f32
    %90 = vector.broadcast %cst_42 : f32 to vector<16x32xf32>
    %91 = arith.maximumf %89, %90 : vector<16x32xf32>
    %92 = arith.truncf %91 : vector<16x32xf32> to vector<16x32xbf16>
    %cst_43 = arith.constant dense<0.000000e+00> : vector<24x32xf32>
    %93 = tpu.matmul %1, %92, %cst_43 {dimension_numbers = #tpu.dot_dimension_numbers<[1], [0], [0], [1], [0, 0, 1, 1], [], []>} : vector<24x16xbf16>, vector<16x32xbf16>, vector<24x32xf32> -> vector<24x32xf32>
    %94 = arith.addf %93, %85 : vector<24x32xf32>
    %cst_44 = arith.constant 0.000000e+00 : f32
    %95 = vector.broadcast %cst_44 : f32 to vector<24x32xf32>
    %96 = arith.maximumf %94, %95 : vector<24x32xf32>
    %cst_45 = arith.constant 1.000000e-07 : f32
    %97 = vector.broadcast %cst_45 : f32 to vector<24x32xf32>
    %98 = arith.addf %96, %97 : vector<24x32xf32>
    %99 = vector.broadcast %78 : vector<1x32xf32> to vector<24x32xf32>
    %100 = arith.mulf %98, %99 : vector<24x32xf32>
    %101 = math.exp %100 : vector<24x32xf32>
    %102 = arith.mulf %101, %98 : vector<24x32xf32>
    %103 = tpu.concatenate %102, %101 in 1 : vector<24x32xf32>, vector<24x32xf32> -> vector<24x64xf32>
    %104 = arith.truncf %103 : vector<24x64xf32> to vector<24x64xbf16>
    %cst_46 = arith.constant dense<0.000000e+00> : vector<16x64xf32>
    %105 = tpu.matmul %2, %104, %cst_46 {dimension_numbers = #tpu.dot_dimension_numbers<[1], [0], [0], [1], [0, 0, 1, 1], [], []>} : vector<16x24xbf16>, vector<24x64xbf16>, vector<16x64xf32> -> vector<16x64xf32>
    %106 = vector.extract_strided_slice %105 {offsets = [0, 0], sizes = [16, 32], strides = [1, 1]} : vector<16x64xf32> to vector<16x32xf32>
    %107 = vector.extract_strided_slice %105 {offsets = [0, 32], sizes = [16, 32], strides = [1, 1]} : vector<16x64xf32> to vector<16x32xf32>
    %cst_47 = arith.constant 1.000000e-16 : f32
    %108 = vector.broadcast %cst_47 : f32 to vector<16x32xf32>
    %109 = arith.maximumf %107, %108 : vector<16x32xf32>
    %110 = tpu.reciprocal %109 {approx = true} : vector<16x32xf32> -> vector<16x32xf32>
    %111 = arith.mulf %106, %110 : vector<16x32xf32>
    %112 = arith.addf %111, %91 : vector<16x32xf32>
    %cst_48 = arith.constant dense<0.000000e+00> : vector<16x32xf32>
    %113 = tpu.matmul %112, %83, %cst_48 {dimension_numbers = #tpu.dot_dimension_numbers<[1], [0], [0], [1], [0, 0, 1, 1], [], []>} : vector<16x32xf32>, vector<32x32xf32>, vector<16x32xf32> -> vector<16x32xf32>
    %114 = vector.broadcast %81 : vector<1x32xf32> to vector<16x32xf32>
    %115 = arith.addf %113, %114 : vector<16x32xf32>
    %116 = arith.addf %75, %115 : vector<16x32xf32>
    %c0_49 = arith.constant 0 : index
    %c0_50 = arith.constant 0 : index
    %c0_51 = arith.constant 0 : index
    %117 = vector.load %arg4[%c0_49, %c0_50, %c0_51] : memref<3x8x32xf32, #tpu.memory_space<vmem>>, vector<1x8x32xf32>
    %118 = vector.shape_cast %117 : vector<1x8x32xf32> to vector<8x32xf32>
    %119 = vector.extract_strided_slice %118 {offsets = [1, 0], sizes = [1, 32], strides = [1, 1]} : vector<8x32xf32> to vector<1x32xf32>
    %120 = vector.extract_strided_slice %118 {offsets = [2, 0], sizes = [1, 32], strides = [1, 1]} : vector<8x32xf32> to vector<1x32xf32>
    %121 = vector.broadcast %119 : vector<1x32xf32> to vector<16x32xf32>
    %122 = arith.mulf %116, %121 : vector<16x32xf32>
    %123 = vector.broadcast %120 : vector<1x32xf32> to vector<16x32xf32>
    %124 = arith.addf %122, %123 : vector<16x32xf32>
    %cst_52 = arith.constant 0.000000e+00 : f32
    %125 = vector.broadcast %cst_52 : f32 to vector<16x32xf32>
    %126 = arith.maximumf %124, %125 : vector<16x32xf32>
    %c0_53 = arith.constant 0 : index
    %c0_54 = arith.constant 0 : index
    %127 = vector.load %arg6[%c0_53, %c0_54] : memref<2x16xf32, #tpu.memory_space<vmem>>, vector<2x16xf32>
    %cst_55 = arith.constant dense<0.000000e+00> : vector<2x32xf32>
    %128 = tpu.matmul %127, %126, %cst_55 {dimension_numbers = #tpu.dot_dimension_numbers<[1], [0], [0], [1], [0, 0, 1, 1], [], []>} : vector<2x16xf32>, vector<16x32xf32>, vector<2x32xf32> -> vector<2x32xf32>
    %c0_56 = arith.constant 0 : index
    %c0_57 = arith.constant 0 : index
    %129 = vector.load %arg7[%c0_56, %c0_57] : memref<32x1xf32, #tpu.memory_space<vmem>>, vector<32x1xf32>
    %cst_58 = arith.constant dense<0.000000e+00> : vector<2x1xf32>
    %130 = tpu.matmul %128, %129, %cst_58 {dimension_numbers = #tpu.dot_dimension_numbers<[1], [0], [0], [1], [0, 0, 1, 1], [], []>} : vector<2x32xf32>, vector<32x1xf32>, vector<2x1xf32> -> vector<2x1xf32>
    %c0_59 = arith.constant 0 : index
    %c0_60 = arith.constant 0 : index
    %131 = vector.load %arg8[%c0_59, %c0_60] : memref<1x1xf32, #tpu.memory_space<vmem>>, vector<1x1xf32>
    %132 = vector.broadcast %131 : vector<1x1xf32> to vector<2x1xf32>
    %133 = arith.addf %130, %132 : vector<2x1xf32>
    %c0_61 = arith.constant 0 : index
    %c0_62 = arith.constant 0 : index
    %134 = vector.load %arg9[%c0_61, %c0_62] : memref<2x1xf32, #tpu.memory_space<vmem>>, vector<2x1xf32>
    tpu.vector_store %arg9[%c0_61, %c0_62], %133 {strides = array<i32>} : memref<2x1xf32, #tpu.memory_space<vmem>>, vector<2x1xf32>,
    return
  }
}

</mosaic_0001>

<bundles_post_ra>
// kernel: tpu_custom_call.1
= control target key start
LH: loop header
LB: loop body
LE: loop exit
PB: predicated region body
PF: predicated region fallthrough
CT: control target
= control target key end

     0   :  { %s1580_s0 = inlined_call_operand.vmem [shape: f32[16,32], index: 0, kind: input, shape index: {}]   ;;  %s1581_s1 = inlined_call_operand.hbm [shape: f32[3,24,32], index: 1, kind: input, shape index: {}]   ;;  %s1582_s2 = inlined_call_operand.vmem [shape: bf16[24,16], index: 2, kind: input, shape index: {}]   ;;  %s1583_s3 = inlined_call_operand.vmem [shape: bf16[16,24], index: 3, kind: input, shape index: {}]   ;;  %s1584_s4 = inlined_call_operand.vmem [shape: f32[3,8,32], index: 4, kind: input, shape index: {}]   ;;  %s1585_s5 = inlined_call_operand.hbm [shape: f32[3,32,32], index: 5, kind: input, shape index: {}]   ;;  %s1586_s6 = inlined_call_operand.vmem [shape: f32[2,16], index: 6, kind: input, shape index: {}]   ;;  %s1587_s7 = inlined_call_operand.vmem [shape: f32[32,1], index: 7, kind: input, shape index: {}]   ;;  %s1588_s8 = inlined_call_operand.<no memory space> [shape: f32[1,1], index: 8, kind: input, shape index: {}]   ;;  %s1589_s9 = inlined_call_operand.vmem [shape: f32[2,1], index: 9, kind: output, shape index: {}]  }
   0x1   :  { %v14_v0 = vstv %s1588_s8 }
   0x2   :  { %15 = vst [vmem:[#allocation2] sm:$0x1] %v14_v0 }
   0x3   :  { %16 = vsyncpa [#allocation4], 0 }
   0x4   :  { %17 = vsyncpa [#allocation6], 0  ;;  %s1297_s11 = smov [#allocation3]  }
   0x5   :  { %s25_s12 = sshll.u32 %s1297_s11, 4  ;;  %s26_s12 = int_to_ptr.vmem [resolvable:$true] %s25_s12 }
   0x6   :  { %s1261_s13 = scalar_lea.vmem %s26_s12, 1152  ;;  %p1266_p1 = scmp.lt.s32.totalorder %s26_s12, %s26_s12 }
   0x7   :  { %p1262_p0 = scmp.ne.s32.totalorder %s26_s12, %s1261_s13  ;;  %p1267_p2 = scmp.lt.s32.totalorder %s1261_s13, %s1261_s13 }
   0x9   :  { %p1268_p3 = por %p1267_p2, %p1266_p1 }
   0xb   :  { %p1269_p4 = pnand %p1268_p3, %p1262_p0 }
   0xd   :  { %1272 = shalt.err (!%p1269_p4)
}
   0xe   :  { %s1298_s14 = smov 128   ;;  %s1299_s15 = smov 8  }
   0xf   :  { %31 = dma.hbm_to_vmem [thread:$0]  %s1581_s1, 1152, %s26_s12, [#allocation4], %s1298_s14, %s1298_s14, %s1299_s15  }
  0x10   :  { %s1300_s8 = smov [#allocation5]  }
  0x11   :  { %s43_s18 = sshll.u32 %s1300_s8, 4  ;;  %s44_s18 = int_to_ptr.vmem [resolvable:$true] %s43_s18 }
  0x12   :  { %s1281_s19 = scalar_lea.vmem %s44_s18, 1536  ;;  %p1286_p6 = scmp.lt.s32.totalorder %s44_s18, %s44_s18 }
  0x13   :  { %p1282_p5 = scmp.ne.s32.totalorder %s44_s18, %s1281_s19  ;;  %p1287_p7 = scmp.lt.s32.totalorder %s1281_s19, %s1281_s19 }
  0x15   :  { %p1288_p8 = por %p1287_p7, %p1286_p6 }
  0x17   :  { %p1289_p9 = pnand %p1288_p8, %p1282_p5 }
  0x19   :  { %1292 = shalt.err (!%p1289_p9)
}
  0x1a   :  { %49 = dma.hbm_to_vmem [thread:$0]  %s1585_s5, 1536, %s44_s18, [#allocation6], %s1298_s14, %s1298_s14, %s1299_s15  }
  0x1b   :  { %1293 = dma.done.wait [#allocation4], 1152  }
  0x1c   :  { %1294 = vsyncadd [#allocation4], 4294966144 }
  0x1d   :  { %1295 = dma.done.wait [#allocation6], 1536  }
  0x1e   :  { %1296 = vsyncadd [#allocation6], 4294965760  ;;  %v1367_v1 = vld [vmem:[%s1580_s0] sm:$0xff]  ;;  %v1372_v2 = vld [vmem:[%s1580_s0 + $0x8] sm:$0xff]  ;;  %vm87_vm0 = vcmask 130048   ;;  %v148_v6 = vlaneseq  ;;  %v1301_v32 = vmov 0.0  }
  0x1f   :  { %v78_v3 = vpack.c.bf16 %v1372_v2, %v1367_v1  ;;  %v1379_v4 = vld [vmem:[%s1582_s2] sm:$0xff]   ;;  %v1386_v5 = vld [vmem:[%s1582_s2 + $0x8] ss:$0 sps:$4 sm:$0xff]   ;;  %v77_v8 = vld [vmem:[#allocation3 + $0x10] sm:$0xff]  ;;  %1110 = vmatprep.subr.bf16.mxu1 %v1301_v32  ;;  %s1302_s2 = smov 32   ;;  %vm1303_vm1 = vmmov 0  }
  0x20   :  { %1106 = vmatprep.mubr.msk.bf16.mxu0 %vm87_vm0, %v1379_v4  ;;  %v1390_v7 = vshrl.u32 %v148_v6, 7  ;;  %v1398_v10 = vld [vmem:[%s1584_s4] sm:$0xff]  ;;  %v76_v19 = vld [vmem:[#allocation3 + $0x8] sm:$0xff]  ;;  %1114 = vmatprep.mubr.msk.bf16.mxu1 %vm1303_vm1, %v1301_v32  ;;  %vm176_vm2 = vcmask 261120   ;;  %vm191_vm3 = vcmask 1043456   ;;  %vm187_vm4 = vcmask 195584  }
  0x21   :  { %1104 = vmatprep.subr.bf16.mxu0 %v78_v3  ;;  %v75_v12 = vld [vmem:[#allocation3] sm:$0xff]  ;;  %v73_v58 = vld [vmem:[#allocation5 + $0x10] sm:$0xff]  ;;  %v72_v60 = vld [vmem:[#allocation5 + $0x8] sm:$0xff]  ;;  %vm1029_vm5 = vcmask 1024  }
  0x22   :  { %1105 = vmatpush3.bf16.msra.mxu0 %v78_v3  ;;  %v1393_v9 = vsub.s32 0, %v1390_v7  ;;  %v1415_v51 = vld [vmem:[%s1583_s3] sm:$0xff]   ;;  %v71_v61 = vld [vmem:[#allocation5] sm:$0xff]  ;;  %s1304_s3 = smov 96  }
  0x23   :  { %v74_v55 = vld [vmem:[#allocation5 + $0x18] sm:$0xff] }
  0x24   :  { %v151_v16 = vrot.slane %v1398_v10, %v1393_v9  ;;  %1118 = vmatprep.subr.mxu0 %v74_v55 }
  0x25   :  { %1107 = vmatmul.mubr.msk.bf16.vlgmr.msra.gmra.mxu0 %vm87_vm0, %v1386_v5 }
  0x26   :  { %1119 = vmatpush3.msra.mxu0 %v74_v55 }
  0x27   :  { %1120 = vmatprep.subr.mxu0 %v73_v58 }
  0x28   :  { %1121 = vmatpush3.msra.mxu0 %v73_v58 }
  0x29   :  { %1122 = vmatprep.subr.mxu0 %v72_v60 }
  0x2a   :  { %1123 = vmatpush3.msra.mxu0 %v72_v60 }
  0x2b   :  { %1124 = vmatprep.subr.mxu0 %v71_v61 }
  0x2c   :  { %1125 = vmatpush3.msra.mxu0 %v71_v61 }
  0xe5   :  { %v1108_v11 = vpop.f32.mrf.mxu0 }
  0xe6   :  { %v137_v13 = vadd.f32 %v1108_v11, %v77_v8 }
  0xe7   :  { %v128_v14 = vpop.f32.mrf.mxu0 }
  0xe8   :  { %v144_v15 = vmax.f32 %v137_v13, 0.0  ;;  %v129_v17 = vadd.f32 %v128_v14, %v75_v12  ;;  %v1431_v13 = vsub.s32 3, %v1390_v7  ;;  %v1434_v14 = vsub.s32 1, %v1390_v7 }
  0xe9   :  { %v1109_v18 = vpop.f32.mrf.mxu0 }
  0xea   :  { %v147_v20 = vadd.f32 1e-07, %v144_v15  ;;  %v142_v21 = vmax.f32 %v129_v17, 0.0  ;;  %v255_v15 = vrot.slane %v1398_v10, %v1431_v13 }
  0xeb   :  { %v131_v22 = vpop.f32.mrf.mxu0 }
  0xec   :  { %v154_v23 = vmul.f32 %v151_v16, %v147_v20  ;;  %v145_v24 = vadd.f32 1e-07, %v142_v21  ;;  %v132_v25 = vadd.f32 %v131_v22, %v76_v19 }
  0xee   :  { %v159_v26 = vmul.f32 1.442695, %v154_v23  ;;  %v152_v27 = vmul.f32 %v151_v16, %v145_v24  ;;  %v143_v28 = vmax.f32 %v132_v25, 0.0 }
  0xf0   :  { %1223 = vpow2.f32 %v159_v26  ;;  %v155_v29 = vmul.f32 1.442695, %v152_v27  ;;  %v146_v30 = vadd.f32 1e-07, %v143_v28  ;;  %v347_v28 = vld [vmem:[#allocation3 + $0x28] sm:$0xff] }
  0xf2   :  { %1225 = vpow2.f32 %v155_v29  ;;  %v153_v31 = vmul.f32 %v151_v16, %v146_v30 }
  0xf4   :  { %v157_v33 = vmul.f32 1.442695, %v153_v31 }
  0xf6   :  { %1227 = vpow2.f32 %v157_v33 }
  0xfd   :  { %v1224_v34 = vpop.eup %1223 }
  0xfe   :  { %v163_v35 = vmul.f32 %v1224_v34, %v147_v20  ;;  %171 = vrot.lane.b32.xlu0 %v1224_v34, %s1302_s2 }
  0xff   :  { %v1226_v36 = vpop.eup %1225 }
 0x100   :  { %v161_v37 = vmul.f32 %v1226_v36, %v145_v24 }
 0x103   :  { %v1228_v38 = vpop.eup %1227 }
 0x104   :  { %v162_v39 = vmul.f32 %v1228_v38, %v146_v30  ;;  %v1205_v40 = vpack.i.bf16 %v1228_v38, %v1226_v36  ;;  %v345_v30 = vld [vmem:[#allocation3 + $0x18] sm:$0xff]  ;;  %v346_v38 = vld [vmem:[#allocation3 + $0x20] sm:$0xff] }
 0x106   :  { %1206 = vrot.lane.b32.xlu0 %v1205_v40, %s1302_s2 }
 0x170   :  { %v172_v41 = vpop.permute.xlu0 %171 }
 0x171   :  { %v179_v42 = vsel %vm176_vm2, %v163_v35, %v172_v41 }
 0x172   :  { %v181_v43 = vpack.c.bf16 %v179_v42, %v179_v42 }
 0x174   :  { %v193_v44 = vsel %vm191_vm3, %v181_v43, 0 }
 0x175   :  { %1111 = vmatpush3.bf16.msra.mxu1 %v193_v44 }
 0x176   :  { %1112 = vmatprep.subr.bf16.mxu1 %v1301_v32 }
 0x178   :  { %v1207_v45 = vpop.permute.xlu0 %1206 }
 0x179   :  { %v1209_v46 = vunpack.i.h.bf16 %v1207_v45  ;;  %v1208_v47 = vunpack.i.l.bf16 %v1207_v45 }
 0x17b   :  { %v177_v48 = vsel %vm176_vm2, %v161_v37, %v1208_v47  ;;  %v178_v49 = vsel %vm176_vm2, %v162_v39, %v1209_v46 }
 0x17c   :  { %v180_v50 = vpack.c.bf16 %v178_v49, %v177_v48 }
 0x17e   :  { %1113 = vmatpush3.bf16.msra.mxu1 %v180_v50 }
 0x17f   :  { %1135 = vmatprep.subr.bf16.mxu1 %v1301_v32 }
 0x181   :  { %1115 = vmatmul.mubr.msk.bf16.vlgmr.msra.gmra.mxu1 %vm187_vm4, %v1415_v51 }
 0x182   :  { %1139 = vmatprep.mubr.msk.bf16.mxu1 %vm1303_vm1, %v1301_v32 }
 0x241   :  { %v229_v52 = vpop.f32.mrf.mxu1 }
 0x242   :  { %v236_v53 = vmax.f32 %v229_v52, 1e-16 }
 0x243   :  { %v1116_v54 = vpop.f32.mrf.mxu1 }
 0x244   :  { %1229 = vrcp.f32 %v236_v53 }
 0x245   :  { %v232_v56 = vpop.f32.mrf.mxu1 }
 0x246   :  { %v237_v57 = vmax.f32 %v232_v56, 1e-16 }
 0x247   :  { %v1117_v59 = vpop.f32.mrf.mxu1 }
 0x248   :  { %1231 = vrcp.f32 %v237_v57 }
 0x251   :  { %v1230_v62 = vpop.eup %1229 }
 0x252   :  { %242 = vrot.lane.b32.xlu1 %v1230_v62, %s1304_s3 }
 0x255   :  { %v1232_v63 = vpop.eup %1231 }
 0x256   :  { %244 = vrot.lane.b32.xlu1 %v1232_v63, %s1304_s3 }
 0x2c4   :  { %v243_v0 = vpop.permute.xlu1 %242 }
 0x2c5   :  { %v248_v3 = vmul.f32 %v243_v0, %v229_v52 }
 0x2c7   :  { %v250_v6 = vadd.f32 %v248_v3, %v1367_v1  ;;  %v1439_v1 = vld [vmem:[%s1584_s4 + $0x8] sm:$0xff] }
 0x2c8   :  { %v245_v8 = vpop.permute.xlu1 %244  ;;  %v351_v16 = vrot.slane %v1439_v1, %v1434_v14  ;;  %v420_v35 = vrot.slane %v1439_v1, %v1393_v9 }
 0x2c9   :  { %v249_v11 = vmul.f32 %v245_v8, %v232_v56  ;;  %1126 = vmatprep.mubr.msk.f32.mxu0 %vm176_vm2, %v250_v6 }
 0x2cb   :  { %v251_v12 = vadd.f32 %v249_v11, %v1372_v2  ;;  %v1444_v2 = vsub.s32 2, %v1390_v7 }
 0x2cd   :  { %1127 = vmatmul.mubr.msk.f32.vlgmr.msra.gmra.mxu0 %vm176_vm2, %v251_v12  ;;  %v357_v19 = vrot.slane %v1439_v1, %v1444_v2 }
 0x2ce   :  { %1131 = vmatprep.mubr.msk.bf16.mxu0 %vm87_vm0, %v1379_v4 }
 0x38d   :  { %v1128_v17 = vpop.f32.mrf.mxu0 }
 0x38e   :  { %v1448_v18 = vadd.f32 %v1128_v17, %v255_v15 }
 0x38f   :  { %v328_v20 = vpop.f32.mrf.mxu0 }
 0x390   :  { %v353_v21 = vmul.f32 %v351_v16, %v1448_v18  ;;  %v1453_v22 = vadd.f32 %v328_v20, %v255_v15 }
 0x392   :  { %v1455_v23 = vadd.f32 %v357_v19, %v353_v21  ;;  %v352_v24 = vmul.f32 %v351_v16, %v1453_v22 }
 0x394   :  { %v1458_v7 = vadd.f32 %v357_v19, %v352_v24  ;;  %v361_v25 = vmax.f32 %v1455_v23, 0.0  ;;  %v343_v19 = vld [vmem:[#allocation5 + $0x38] sm:$0xff]  ;;  %v342_v24 = vld [vmem:[#allocation5 + $0x30] sm:$0xff] }
 0x396   :  { %v360_v26 = vmax.f32 %v1458_v7, 0.0  ;;  %v1497_v7 = vld [vmem:[%s1584_s4 + $0x10] sm:$0xff] }
 0x398   :  { %v362_v27 = vpack.c.bf16 %v361_v25, %v360_v26 }
 0x39a   :  { %1129 = vmatprep.subr.bf16.mxu0 %v362_v27 }
 0x39b   :  { %1130 = vmatpush3.bf16.msra.mxu0 %v362_v27 }
 0x39c   :  { %1143 = vmatprep.subr.mxu0 %v343_v19 }
 0x39e   :  { %1132 = vmatmul.mubr.msk.bf16.vlgmr.msra.gmra.mxu0 %vm87_vm0, %v1386_v5 }
 0x39f   :  { %1144 = vmatpush3.msra.mxu0 %v343_v19 }
 0x3a0   :  { %1145 = vmatprep.subr.mxu0 %v342_v24 }
 0x3a1   :  { %1146 = vmatpush3.msra.mxu0 %v342_v24 }
 0x45e   :  { %v1133_v29 = vpop.f32.mrf.mxu0 }
 0x45f   :  { %v406_v31 = vadd.f32 %v1133_v29, %v347_v28  ;;  %v341_v28 = vld [vmem:[#allocation5 + $0x28] sm:$0xff]  ;;  %v340_v29 = vld [vmem:[#allocation5 + $0x20] sm:$0xff] }
 0x460   :  { %v397_v33 = vpop.f32.mrf.mxu0  ;;  %1147 = vmatprep.subr.mxu0 %v341_v28 }
 0x461   :  { %v413_v34 = vmax.f32 %v406_v31, 0.0  ;;  %v398_v36 = vadd.f32 %v397_v33, %v345_v30  ;;  %1148 = vmatpush3.msra.mxu0 %v341_v28 }
 0x462   :  { %v1134_v37 = vpop.f32.mrf.mxu0  ;;  %1149 = vmatprep.subr.mxu0 %v340_v29 }
 0x463   :  { %v416_v39 = vadd.f32 1e-07, %v413_v34  ;;  %v411_v40 = vmax.f32 %v398_v36, 0.0  ;;  %1150 = vmatpush3.msra.mxu0 %v340_v29 }
 0x464   :  { %v400_v41 = vpop.f32.mrf.mxu0  ;;  %1160 = vmatprep.subr.bf16.mxu0 %v1301_v32 }
 0x465   :  { %v423_v42 = vmul.f32 %v420_v35, %v416_v39  ;;  %v414_v43 = vadd.f32 1e-07, %v411_v40  ;;  %v401_v44 = vadd.f32 %v400_v41, %v346_v38  ;;  %v513_v38 = vrot.slane %v1439_v1, %v1431_v13 }
 0x466   :  { %v611_v40 = vrot.slane %v1497_v7, %v1434_v14 }
 0x467   :  { %v428_v45 = vmul.f32 1.442695, %v423_v42  ;;  %v421_v46 = vmul.f32 %v420_v35, %v414_v43  ;;  %v412_v47 = vmax.f32 %v401_v44, 0.0  ;;  %v617_v42 = vrot.slane %v1497_v7, %v1444_v2 }
 0x469   :  { %1233 = vpow2.f32 %v428_v45  ;;  %v424_v48 = vmul.f32 1.442695, %v421_v46  ;;  %v415_v49 = vadd.f32 1e-07, %v412_v47 }
 0x46b   :  { %1235 = vpow2.f32 %v424_v48  ;;  %v422_v50 = vmul.f32 %v420_v35, %v415_v49 }
 0x46d   :  { %v426_v52 = vmul.f32 1.442695, %v422_v50  ;;  %v605_v50 = vld [vmem:[#allocation3 + $0x30] sm:$0xff] }
 0x46f   :  { %1237 = vpow2.f32 %v426_v52 }
 0x476   :  { %v1234_v53 = vpop.eup %1233 }
 0x477   :  { %v432_v54 = vmul.f32 %v1234_v53, %v416_v39  ;;  %440 = vrot.lane.b32.xlu0 %v1234_v53, %s1302_s2 }
 0x478   :  { %v1236_v55 = vpop.eup %1235 }
 0x479   :  { %v430_v56 = vmul.f32 %v1236_v55, %v414_v43 }
 0x47c   :  { %v1238_v57 = vpop.eup %1237 }
 0x47d   :  { %v431_v58 = vmul.f32 %v1238_v57, %v415_v49  ;;  %v1210_v59 = vpack.i.bf16 %v1238_v57, %v1236_v55  ;;  %v680_v55 = vrot.slane %v1497_v7, %v1393_v9 }
 0x47f   :  { %1211 = vrot.lane.b32.xlu1 %v1210_v59, %s1302_s2 }
 0x4e9   :  { %v441_v60 = vpop.permute.xlu0 %440 }
 0x4ea   :  { %v447_v61 = vsel %vm176_vm2, %v432_v54, %v441_v60 }
 0x4eb   :  { %v449_v62 = vpack.c.bf16 %v447_v61, %v447_v61 }
 0x4ed   :  { %v451_v63 = vsel %vm191_vm3, %v449_v62, 0 }
 0x4ee   :  { %1136 = vmatpush3.bf16.msra.mxu1 %v451_v63 }
 0x4ef   :  { %1137 = vmatprep.subr.bf16.mxu1 %v1301_v32 }
 0x4f1   :  { %v1212_v0 = vpop.permute.xlu1 %1211 }
 0x4f2   :  { %v1214_v3 = vunpack.i.h.bf16 %v1212_v0  ;;  %v1213_v6 = vunpack.i.l.bf16 %v1212_v0 }
 0x4f4   :  { %v446_v8 = vsel %vm176_vm2, %v431_v58, %v1214_v3  ;;  %v445_v11 = vsel %vm176_vm2, %v430_v56, %v1213_v6  ;;  %v606_v58 = vld [vmem:[#allocation3 + $0x38] sm:$0xff] }
 0x4f5   :  { %v448_v12 = vpack.c.bf16 %v446_v8, %v445_v11 }
 0x4f7   :  { %1138 = vmatpush3.bf16.msra.mxu1 %v448_v12 }
 0x4fa   :  { %1140 = vmatmul.mubr.msk.bf16.vlgmr.msra.gmra.mxu1 %vm187_vm4, %v1415_v51 }
 0x4fb   :  { %1156 = vmatprep.mubr.msk.bf16.mxu1 %vm87_vm0, %v1379_v4 }
 0x5ba   :  { %v487_v15 = vpop.f32.mrf.mxu1 }
 0x5bb   :  { %v494_v16 = vmax.f32 %v487_v15, 1e-16 }
 0x5bc   :  { %v1141_v17 = vpop.f32.mrf.mxu1 }
 0x5bd   :  { %1239 = vrcp.f32 %v494_v16 }
 0x5be   :  { %v490_v20 = vpop.f32.mrf.mxu1 }
 0x5bf   :  { %v495_v21 = vmax.f32 %v490_v20, 1e-16 }
 0x5c0   :  { %v1142_v27 = vpop.f32.mrf.mxu1 }
 0x5c1   :  { %1241 = vrcp.f32 %v495_v21 }
 0x5ca   :  { %v1240_v4 = vpop.eup %1239 }
 0x5cb   :  { %500 = vrot.lane.b32.xlu0 %v1240_v4, %s1304_s3 }
 0x5ce   :  { %v1242_v30 = vpop.eup %1241 }
 0x5cf   :  { %502 = vrot.lane.b32.xlu1 %v1242_v30, %s1304_s3 }
 0x63d   :  { %v501_v31 = vpop.permute.xlu0 %500 }
 0x63e   :  { %v506_v33 = vmul.f32 %v501_v31, %v487_v15 }
 0x640   :  { %v508_v34 = vadd.f32 %v506_v33, %v360_v26 }
 0x641   :  { %v503_v35 = vpop.permute.xlu1 %502 }
 0x642   :  { %v507_v36 = vmul.f32 %v503_v35, %v490_v20  ;;  %1151 = vmatprep.mubr.msk.f32.mxu0 %vm176_vm2, %v508_v34 }
 0x644   :  { %v509_v37 = vadd.f32 %v507_v36, %v361_v25 }
 0x646   :  { %1152 = vmatmul.mubr.msk.f32.vlgmr.msra.gmra.mxu0 %vm176_vm2, %v509_v37 }
 0x647   :  { %1164 = vmatprep.mubr.msk.bf16.mxu0 %vm1303_vm1, %v1301_v32 }
 0x706   :  { %v1153_v26 = vpop.f32.mrf.mxu0 }
 0x707   :  { %v592_v39 = vadd.f32 %v1153_v26, %v513_v38 }
 0x708   :  { %v586_v23 = vpop.f32.mrf.mxu0 }
 0x709   :  { %v1502_v25 = vadd.f32 %v592_v39, %v1448_v18  ;;  %v587_v41 = vadd.f32 %v586_v23, %v513_v38  ;;  %v603_v39 = vld [vmem:[#allocation5 + $0x58] sm:$0xff] }
 0x70b   :  { %v613_v1 = vmul.f32 %v611_v40, %v1502_v25  ;;  %v1508_v43 = vadd.f32 %v587_v41, %v1453_v22  ;;  %v607_v22 = vld [vmem:[#allocation3 + $0x40] sm:$0xff]  ;;  %v602_v41 = vld [vmem:[#allocation5 + $0x50] sm:$0xff] }
 0x70d   :  { %v612_v44 = vmul.f32 %v611_v40, %v1508_v43  ;;  %v1511_v45 = vadd.f32 %v617_v42, %v613_v1  ;;  %v601_v1 = vld [vmem:[#allocation5 + $0x48] sm:$0xff] }
 0x70f   :  { %v1513_v46 = vadd.f32 %v617_v42, %v612_v44  ;;  %v621_v18 = vmax.f32 %v1511_v45, 0.0  ;;  %v946_v45 = vld [vmem:[%s1587_s7 + $0x8] sm:$0xff] }
 0x711   :  { %v620_v47 = vmax.f32 %v1513_v46, 0.0  ;;  %v947_v46 = vld [vmem:[%s1587_s7 + $0x10] sm:$0xff] }
 0x713   :  { %v622_v48 = vpack.c.bf16 %v621_v18, %v620_v47 }
 0x715   :  { %1154 = vmatprep.subr.bf16.mxu1 %v622_v48 }
 0x716   :  { %1155 = vmatpush3.bf16.msra.mxu1 %v622_v48 }
 0x717   :  { %1168 = vmatprep.subr.mxu1 %v603_v39 }
 0x719   :  { %1157 = vmatmul.mubr.msk.bf16.vlgmr.msra.gmra.mxu1 %vm87_vm0, %v1386_v5 }
 0x71a   :  { %1169 = vmatpush3.msra.mxu1 %v603_v39 }
 0x71b   :  { %1170 = vmatprep.subr.mxu1 %v602_v41 }
 0x71c   :  { %1171 = vmatpush3.msra.mxu1 %v602_v41 }
 0x71d   :  { %1172 = vmatprep.subr.mxu1 %v601_v1 }
 0x71e   :  { %1173 = vmatpush3.msra.mxu1 %v601_v1 }
 0x7d9   :  { %v1158_v49 = vpop.f32.mrf.mxu1 }
 0x7da   :  { %v666_v52 = vadd.f32 %v1158_v49, %v607_v22 }
 0x7db   :  { %v657_v53 = vpop.f32.mrf.mxu1 }
 0x7dc   :  { %v673_v54 = vmax.f32 %v666_v52, 0.0  ;;  %v658_v56 = vadd.f32 %v657_v53, %v605_v50 }
 0x7dd   :  { %v1159_v57 = vpop.f32.mrf.mxu1 }
 0x7de   :  { %v676_v59 = vadd.f32 1e-07, %v673_v54  ;;  %v671_v60 = vmax.f32 %v658_v56, 0.0  ;;  %v860_v57 = vrot.slane %v1398_v10, %v1434_v14  ;;  %v871_v14 = vld [vmem:[%s1586_s6] sm:$0x3] }
 0x7df   :  { %v660_v61 = vpop.f32.mrf.mxu1 }
 0x7e0   :  { %v683_v62 = vmul.f32 %v680_v55, %v676_v59  ;;  %v674_v63 = vadd.f32 1e-07, %v671_v60  ;;  %v661_v0 = vadd.f32 %v660_v61, %v606_v58  ;;  %v866_v60 = vrot.slane %v1398_v10, %v1444_v2  ;;  %v945_v10 = vld [vmem:[%s1587_s7] sm:$0xff] }
 0x7e2   :  { %v688_v3 = vmul.f32 1.442695, %v683_v62  ;;  %v681_v5 = vmul.f32 %v680_v55, %v674_v63  ;;  %v672_v6 = vmax.f32 %v661_v0, 0.0 }
 0x7e4   :  { %1243 = vpow2.f32 %v688_v3  ;;  %v684_v8 = vmul.f32 1.442695, %v681_v5  ;;  %v675_v11 = vadd.f32 1e-07, %v672_v6 }
 0x7e6   :  { %1245 = vpow2.f32 %v684_v8  ;;  %v682_v12 = vmul.f32 %v680_v55, %v675_v11  ;;  %v948_v55 = vld [vmem:[%s1587_s7 + $0x18] sm:$0xff] }
 0x7e8   :  { %v686_v15 = vmul.f32 1.442695, %v682_v12 }
 0x7ea   :  { %1247 = vpow2.f32 %v686_v15 }
 0x7f1   :  { %v1244_v9 = vpop.eup %1243 }
 0x7f2   :  { %v692_v16 = vmul.f32 %v1244_v9, %v676_v59  ;;  %700 = vrot.lane.b32.xlu0 %v1244_v9, %s1302_s2 }
 0x7f3   :  { %v1246_v17 = vpop.eup %1245 }
 0x7f4   :  { %v690_v19 = vmul.f32 %v1246_v17, %v674_v63 }
 0x7f7   :  { %v1248_v20 = vpop.eup %1247 }
 0x7f8   :  { %v691_v21 = vmul.f32 %v1248_v20, %v675_v11  ;;  %v1215_v24 = vpack.i.bf16 %v1248_v20, %v1246_v17 }
 0x7fa   :  { %1216 = vrot.lane.b32.xlu1 %v1215_v24, %s1302_s2 }
 0x864   :  { %v701_v27 = vpop.permute.xlu0 %700 }
 0x865   :  { %v707_v28 = vsel %vm176_vm2, %v692_v16, %v701_v27 }
 0x866   :  { %v709_v29 = vpack.c.bf16 %v707_v28, %v707_v28 }
 0x868   :  { %v711_v4 = vsel %vm191_vm3, %v709_v29, 0 }
 0x869   :  { %1161 = vmatpush3.bf16.msra.mxu0 %v711_v4 }
 0x86a   :  { %1162 = vmatprep.subr.bf16.mxu0 %v1301_v32 }
 0x86c   :  { %v1217_v30 = vpop.permute.xlu1 %1216 }
 0x86d   :  { %v1219_v31 = vunpack.i.h.bf16 %v1217_v30  ;;  %v1218_v33 = vunpack.i.l.bf16 %v1217_v30 }
 0x86f   :  { %v706_v34 = vsel %vm176_vm2, %v691_v21, %v1219_v31  ;;  %v705_v35 = vsel %vm176_vm2, %v690_v19, %v1218_v33 }
 0x870   :  { %v708_v36 = vpack.c.bf16 %v706_v34, %v705_v35 }
 0x872   :  { %1163 = vmatpush3.bf16.msra.mxu0 %v708_v36 }
 0x873   :  { %1186 = vmatprep.subr.mxu0 %v1301_v32 }
 0x875   :  { %1165 = vmatmul.mubr.msk.bf16.vlgmr.msra.gmra.mxu0 %vm187_vm4, %v1415_v51  ;;  %v600_v51 = vld [vmem:[#allocation5 + $0x40] sm:$0xff] }
 0x876   :  { %1194 = vmatprep.mubr.msk.f32.mxu0 %vm1303_vm1, %v1301_v32  ;;  %1174 = vmatprep.subr.mxu1 %v600_v51 }
 0x877   :  { %1175 = vmatpush3.msra.mxu1 %v600_v51  ;;  %1187 = vmatpush3.msra.mxu0 %v948_v55 }
 0x878   :  { %1179 = vmatprep.subr.mxu1 %v1301_v32  ;;  %1188 = vmatprep.subr.mxu0 %v1301_v32 }
 0x879   :  { %1189 = vmatpush3.msra.mxu0 %v947_v46 }
 0x87a   :  { %1190 = vmatprep.subr.mxu0 %v1301_v32 }
 0x87b   :  { %1191 = vmatpush3.msra.mxu0 %v946_v45 }
 0x87c   :  { %1192 = vmatprep.subr.mxu0 %v1301_v32 }
 0x87d   :  { %1193 = vmatpush3.msra.mxu0 %v945_v10 }
 0x935   :  { %v747_v37 = vpop.f32.mrf.mxu0 }
 0x936   :  { %v754_v38 = vmax.f32 %v747_v37, 1e-16 }
 0x937   :  { %v1166_v26 = vpop.f32.mrf.mxu0 }
 0x938   :  { %1249 = vrcp.f32 %v754_v38 }
 0x939   :  { %v750_v40 = vpop.f32.mrf.mxu0 }
 0x93a   :  { %v755_v23 = vmax.f32 %v750_v40, 1e-16 }
 0x93b   :  { %v1167_v42 = vpop.f32.mrf.mxu0 }
 0x93c   :  { %1251 = vrcp.f32 %v755_v23 }
 0x945   :  { %v1250_v44 = vpop.eup %1249 }
 0x946   :  { %760 = vrot.lane.b32.xlu0 %v1250_v44, %s1304_s3 }
 0x949   :  { %v1252_v48 = vpop.eup %1251 }
 0x94a   :  { %762 = vrot.lane.b32.xlu1 %v1252_v48, %s1304_s3 }
 0x9b8   :  { %v761_v22 = vpop.permute.xlu0 %760 }
 0x9b9   :  { %v766_v49 = vmul.f32 %v761_v22, %v747_v37 }
 0x9bb   :  { %v768_v50 = vadd.f32 %v766_v49, %v620_v47  ;;  %v773_v47 = vrot.slane %v1497_v7, %v1431_v13 }
 0x9bc   :  { %v763_v52 = vpop.permute.xlu1 %762 }
 0x9bd   :  { %v767_v53 = vmul.f32 %v763_v52, %v750_v40  ;;  %1176 = vmatprep.mubr.msk.f32.mxu1 %vm176_vm2, %v768_v50 }
 0x9bf   :  { %v769_v54 = vadd.f32 %v767_v53, %v621_v18 }
 0x9c1   :  { %1177 = vmatmul.mubr.msk.f32.vlgmr.msra.gmra.mxu1 %vm176_vm2, %v769_v54 }
 0x9c2   :  { %1183 = vmatprep.mubr.msk.f32.mxu1 %vm1303_vm1, %v1301_v32 }
 0xa81   :  { %v1178_v18 = vpop.f32.mrf.mxu1 }
 0xa82   :  { %v852_v56 = vadd.f32 %v1178_v18, %v773_v47 }
 0xa83   :  { %v846_v58 = vpop.f32.mrf.mxu1 }
 0xa84   :  { %v856_v59 = vadd.f32 %v852_v56, %v1502_v25  ;;  %v847_v61 = vadd.f32 %v846_v58, %v773_v47  ;;  %v1058_v25 = vld [vmem:[#allocation2] ss:$0 sm:$0xff] }
 0xa86   :  { %v862_v62 = vmul.f32 %v860_v57, %v856_v59  ;;  %v855_v63 = vadd.f32 %v847_v61, %v1508_v43 }
 0xa88   :  { %v868_v0 = vadd.f32 %v866_v60, %v862_v62  ;;  %v861_v3 = vmul.f32 %v860_v57, %v855_v63 }
 0xa8a   :  { %v870_v5 = vmax.f32 %v868_v0, 0.0  ;;  %v867_v6 = vadd.f32 %v866_v60, %v861_v3 }
 0xa8c   :  { %v869_v13 = vmax.f32 %v867_v6, 0.0  ;;  %1180 = vmatpush3.msra.mxu1 %v870_v5 }
 0xa8d   :  { %1181 = vmatprep.subr.mxu1 %v1301_v32 }
 0xa8e   :  { %1182 = vmatpush3.msra.mxu1 %v869_v13 }
 0xa8f   :  { %1184 = vmatmul.mubr.msk.f32.vlgmr.msra.gmra.mxu1 %vm87_vm0, %v871_v14 }
 0xb4f   :  { %v941_v2 = vpop.f32.mrf.mxu1 }
 0xb50   :  { %1195 = vmatmul.mubr.msk.f32.vlgmr.msra.gmra.mxu0 %vm176_vm2, %v941_v2 }
 0xb51   :  { %v1185_v7 = vpop.f32.mrf.mxu1 }
 0xc10   :  { %v1025_v43 = vpop.f32.mrf.mxu0 }
 0xc11   :  { %v1026_v8 = vadd.f32 %v1058_v25, %v1025_v43 }
 0xc12   :  { %v1196_v11 = vpop.f32.mrf.mxu0 }
 0xc13   :  { %1030 = vst.msk [vmem:[%s1589_s9] sm:$0x3] %vm1029_vm5, %v1026_v8 }
 0xc14   :  { %1035 = vsyncpa [#allocation4], 1 }
 0xc15   :  { %1036 = vsyncpa [#allocation6], 1 }

</bundles_post_ra>
